<compile_context>
chip_gen: v7x
topology: tpu7x:2x2x1
jax: 0.10.0
libtpu: 0.0.40
codegen_flags: <defaults>
</compile_context>

<pallas_src>
import jax
import jax.numpy as jnp
from jax.experimental import pallas as pl
from jax.experimental.pallas import tpu as pltpu


def decoder_kernel(z_ref, w1_ref, b1_ref, w2_ref, b2_ref, o_ref):
    # Layer 1: h = relu(z @ W1 + b1)   -- bf16 operands, f32 MXU accumulation.
    h = jnp.dot(z_ref[...], w1_ref[...], preferred_element_type=jnp.float32)
    h = jnp.maximum(h + b1_ref[...], 0.0)                       # (tile_b, H1)

    # Layer 2: o = sigmoid(h @ W2 + b2)
    o = jnp.dot(h.astype(jnp.bfloat16), w2_ref[...],
                preferred_element_type=jnp.float32)              # (tile_b, D)
    o = o + b2_ref[...]

    # sigmoid(x) = 1 / (1 + exp(-x)): exp on the EUP, approximate reciprocal
    # also on the EUP slot -> epilogue stays off the VALU.
    o_ref[...] = pl.reciprocal(1.0 + jnp.exp(-o), approx=True).astype(o_ref.dtype)


def _round_up(x, m):
    return ((x + m - 1) // m) * m


def prepare_decoder_params(w1, b1, w2, b2):
    """One-time param prep: bf16 matmul weights, f32 (1, N) row biases.

    Weights are stored (in_features, out_features) = W.T relative to torch.
    Call this once (outside the per-step forward) so no per-call cast passes run.
    """
    return (w1.astype(jnp.bfloat16),
            b1.reshape(1, -1).astype(jnp.float32),
            w2.astype(jnp.bfloat16),
            b2.reshape(1, -1).astype(jnp.float32))


def decoder_forward(z, w1, b1, w2, b2, *, tile_b=512, out_dtype=jnp.float32):
    """z: (B, latent); weights as returned by prepare_decoder_params.

    Returns (B, 1, 28, 28) in out_dtype (float32 by default, matching torch).
    """
    B, L = z.shape
    H1 = w1.shape[1]
    D = w2.shape[1]
    assert D == 28 * 28, "input_dims must be 784 to reshape to (-1, 1, 28, 28)"

    # --- adaptive batch tiling: multiple of 8 sublanes, minimal padding -------
    B8 = _round_up(B, 8)
    tile_b = max(8, _round_up(tile_b, 8))
    if B8 <= tile_b:
        tile_b = B8
        num_tiles = 1
    else:
        num_tiles = -(-B8 // tile_b)                 # ceil
        tile_b = _round_up(-(-B8 // num_tiles), 8)   # shrink tile to cut padding
    B_pad = num_tiles * tile_b

    zp = jnp.pad(z, ((0, B_pad - B), (0, 0))) if B_pad != B else z

    # Activations / weights as bf16 MXU operands (no-op if already prepared).
    z_bf = zp if zp.dtype == jnp.bfloat16 else zp.astype(jnp.bfloat16)
    w1_bf = w1 if w1.dtype == jnp.bfloat16 else w1.astype(jnp.bfloat16)
    w2_bf = w2 if w2.dtype == jnp.bfloat16 else w2.astype(jnp.bfloat16)
    b1_f = b1.reshape(1, H1).astype(jnp.float32)
    b2_f = b2.reshape(1, D).astype(jnp.float32)

    flops = 2 * B_pad * (L * H1 + H1 * D)
    bytes_accessed = (z_bf.size * 2 + w1_bf.size * 2 + w2_bf.size * 2
                      + b1_f.size * 4 + b2_f.size * 4
                      + B_pad * D * jnp.dtype(out_dtype).itemsize)

    out = pl.pallas_call(
        decoder_kernel,
        out_shape=jax.ShapeDtypeStruct((B_pad, D), out_dtype),
        grid_spec=pl.GridSpec(
            grid=(num_tiles,),
            in_specs=[
                # streamed activation tile (double-buffered by Pallas)
                pl.BlockSpec((tile_b, L), lambda i: (i, 0)),
                # weights / biases: constant block index -> loaded once, VMEM-resident
                pl.BlockSpec((L, H1), lambda i: (0, 0)),
                pl.BlockSpec((1, H1), lambda i: (0, 0)),
                pl.BlockSpec((H1, D), lambda i: (0, 0)),
                pl.BlockSpec((1, D), lambda i: (0, 0)),
            ],
            # Un-padded 784-wide output (full last-dim extent): no de-pad copy needed.
            out_specs=pl.BlockSpec((tile_b, D), lambda i: (i, 0)),
        ),
        compiler_params=pltpu.CompilerParams(
            dimension_semantics=("parallel",),       # shards batch tiles across TCs
        ),
        cost_estimate=pl.CostEstimate(
            flops=flops,
            transcendentals=2 * B_pad * D,           # exp + reciprocal per element
            bytes_accessed=bytes_accessed,
        ),
    )(z_bf, w1_bf, b1_f, w2_bf, b2_f)

    # Batch slice (no-op when B == B_pad) + free reshape to NCHW.
    return out[:B].reshape((-1, 1, 28, 28))


def init_params(key, input_dims, h1_dims, latent_dims):
    """Deterministic init mimicking nn.Linear's U(-1/sqrt(fan_in), 1/sqrt(fan_in))."""
    k1, k2, k3, k4 = jax.random.split(key, 4)
    bound1 = 1.0 / jnp.sqrt(latent_dims)
    bound2 = 1.0 / jnp.sqrt(h1_dims)
    # Weights stored as (in_features, out_features) = W.T relative to torch.
    w1 = jax.random.uniform(k1, (latent_dims, h1_dims), jnp.float32, -bound1, bound1)
    b1 = jax.random.uniform(k2, (1, h1_dims), jnp.float32, -bound1, bound1)
    w2 = jax.random.uniform(k3, (h1_dims, input_dims), jnp.float32, -bound2, bound2)
    b2 = jax.random.uniform(k4, (1, input_dims), jnp.float32, -bound2, bound2)
    return w1, b1, w2, b2


if __name__ == "__main__":
    # Decoder(input_dims=784, h1_dims=128, latent_dims=32)
    input_dims, h1_dims, latent_dims = 28 * 28, 128, 32
    batch = 8

    key = jax.random.PRNGKey(0)
    kz, kp = jax.random.split(key)
    z = jax.random.normal(kz, (batch, latent_dims), jnp.float32)
    w1, b1, w2, b2 = init_params(kp, input_dims, h1_dims, latent_dims)

    # One-time param preparation (bf16 weights) -- not paid per forward call.
    p_w1, p_b1, p_w2, p_b2 = prepare_decoder_params(w1, b1, w2, b2)

    out = decoder_forward(z, p_w1, p_b1, p_w2, p_b2)
    out = jax.block_until_ready(out)

    # Correctness check vs. plain-JAX f32 reference of the same math.
    # Tolerance accounts for bf16 matmul operands + approximate reciprocal.
    ref = jax.nn.sigmoid(
        jnp.maximum(z @ w1 + b1, 0.0) @ w2 + b2
    ).reshape((-1, 1, 28, 28))
    assert out.shape == (batch, 1, 28, 28)
    assert jnp.allclose(out, ref, atol=2e-2, rtol=0.0), (
        float(jnp.max(jnp.abs(out - ref))))

    print("KERNEL_OK")
</pallas_src>

<mosaic_0001>
module attributes {stable_mosaic.version = 11 : i64} {
  func.func @decoder_kernel(%arg0: i32, %arg1: memref<8x32xbf16, #tpu.memory_space<vmem>>, %arg2: memref<32x128xbf16, #tpu.memory_space<vmem>>, %arg3: memref<1x128xf32, #tpu.memory_space<vmem>>, %arg4: memref<128x784xbf16, #tpu.memory_space<vmem>>, %arg5: memref<1x784xf32, #tpu.memory_space<vmem>>, %arg6: memref<8x784xf32, #tpu.memory_space<vmem>>) attributes {dimension_semantics = [#tpu.dimension_semantics<parallel>], iteration_bounds = array<i64: 1>, scalar_prefetch = 0 : i64, scratch_operands = 0 : i64, tpu.core_type = #tpu.core_type<tc>, window_params = [{transform_indices = @transform_0, window_bounds = array<i64: 8, 32>}, {pipeline_mode = #tpu.pipeline_mode<synchronous>, transform_indices = @transform_1, window_bounds = array<i64: 32, 128>}, {pipeline_mode = #tpu.pipeline_mode<synchronous>, transform_indices = @transform_2, window_bounds = array<i64: 1, 128>}, {pipeline_mode = #tpu.pipeline_mode<synchronous>, transform_indices = @transform_3, window_bounds = array<i64: 128, 784>}, {pipeline_mode = #tpu.pipeline_mode<synchronous>, transform_indices = @transform_4, window_bounds = array<i64: 1, 784>}, {transform_indices = @transform_5, window_bounds = array<i64: 8, 784>}]} {
    %c0 = arith.constant 0 : index
    %c0_0 = arith.constant 0 : index
    %0 = vector.load %arg1[%c0, %c0_0] : memref<8x32xbf16, #tpu.memory_space<vmem>>, vector<8x32xbf16>
    %c0_1 = arith.constant 0 : index
    %c0_2 = arith.constant 0 : index
    %1 = vector.load %arg2[%c0_1, %c0_2] : memref<32x128xbf16, #tpu.memory_space<vmem>>, vector<32x128xbf16>
    %cst = arith.constant dense<0.000000e+00> : vector<8x128xf32>
    %2 = tpu.matmul %0, %1, %cst {dimension_numbers = #tpu.dot_dimension_numbers<[1], [0], [0], [1], [0, 0, 1, 1], [], []>} : vector<8x32xbf16>, vector<32x128xbf16>, vector<8x128xf32> -> vector<8x128xf32>
    %c0_3 = arith.constant 0 : index
    %c0_4 = arith.constant 0 : index
    %3 = vector.load %arg3[%c0_3, %c0_4] : memref<1x128xf32, #tpu.memory_space<vmem>>, vector<1x128xf32>
    %4 = vector.broadcast %3 : vector<1x128xf32> to vector<8x128xf32>
    %5 = arith.addf %2, %4 : vector<8x128xf32>
    %cst_5 = arith.constant 0.000000e+00 : f32
    %6 = vector.broadcast %cst_5 : f32 to vector<8x128xf32>
    %7 = arith.maximumf %5, %6 : vector<8x128xf32>
    %8 = arith.truncf %7 : vector<8x128xf32> to vector<8x128xbf16>
    %c0_6 = arith.constant 0 : index
    %c0_7 = arith.constant 0 : index
    %9 = vector.load %arg4[%c0_6, %c0_7] : memref<128x784xbf16, #tpu.memory_space<vmem>>, vector<128x784xbf16>
    %cst_8 = arith.constant dense<0.000000e+00> : vector<8x784xf32>
    %10 = tpu.matmul %8, %9, %cst_8 {dimension_numbers = #tpu.dot_dimension_numbers<[1], [0], [0], [1], [0, 0, 1, 1], [], []>} : vector<8x128xbf16>, vector<128x784xbf16>, vector<8x784xf32> -> vector<8x784xf32>
    %c0_9 = arith.constant 0 : index
    %c0_10 = arith.constant 0 : index
    %11 = vector.load %arg5[%c0_9, %c0_10] : memref<1x784xf32, #tpu.memory_space<vmem>>, vector<1x784xf32>
    %12 = vector.broadcast %11 : vector<1x784xf32> to vector<8x784xf32>
    %13 = arith.addf %10, %12 : vector<8x784xf32>
    %cst_11 = arith.constant 0.000000e+00 : f32
    %14 = vector.broadcast %cst_11 : f32 to vector<8x784xf32>
    %15 = arith.subf %14, %13 : vector<8x784xf32>
    %16 = math.exp %15 : vector<8x784xf32>
    %cst_12 = arith.constant 1.000000e+00 : f32
    %17 = vector.broadcast %cst_12 : f32 to vector<8x784xf32>
    %18 = arith.addf %17, %16 : vector<8x784xf32>
    %19 = tpu.reciprocal %18 {approx = true} : vector<8x784xf32> -> vector<8x784xf32>
    %c0_13 = arith.constant 0 : index
    %c0_14 = arith.constant 0 : index
    %20 = vector.load %arg6[%c0_13, %c0_14] : memref<8x784xf32, #tpu.memory_space<vmem>>, vector<8x784xf32>
    tpu.vector_store %arg6[%c0_13, %c0_14], %19 {strides = array<i32>} : memref<8x784xf32, #tpu.memory_space<vmem>>, vector<8x784xf32>,
    return
  }
  func.func @transform_0(%arg0: i32) -> (i32, i32) {
    %c0_i32 = arith.constant 0 : i32
    %c0_i32_0 = arith.constant 0 : i32
    return %arg0, %c0_i32 : i32, i32
  }
  func.func @transform_1(%arg0: i32) -> (i32, i32) {
    %c0_i32 = arith.constant 0 : i32
    %c0_i32_0 = arith.constant 0 : i32
    %c0_i32_1 = arith.constant 0 : i32
    return %c0_i32, %c0_i32_0 : i32, i32
  }
  func.func @transform_2(%arg0: i32) -> (i32, i32) {
    %c0_i32 = arith.constant 0 : i32
    %c0_i32_0 = arith.constant 0 : i32
    %c0_i32_1 = arith.constant 0 : i32
    return %c0_i32, %c0_i32_0 : i32, i32
  }
  func.func @transform_3(%arg0: i32) -> (i32, i32) {
    %c0_i32 = arith.constant 0 : i32
    %c0_i32_0 = arith.constant 0 : i32
    %c0_i32_1 = arith.constant 0 : i32
    return %c0_i32, %c0_i32_0 : i32, i32
  }
  func.func @transform_4(%arg0: i32) -> (i32, i32) {
    %c0_i32 = arith.constant 0 : i32
    %c0_i32_0 = arith.constant 0 : i32
    %c0_i32_1 = arith.constant 0 : i32
    return %c0_i32, %c0_i32_0 : i32, i32
  }
  func.func @transform_5(%arg0: i32) -> (i32, i32) {
    %c0_i32 = arith.constant 0 : i32
    %c0_i32_0 = arith.constant 0 : i32
    return %arg0, %c0_i32 : i32, i32
  }
}

</mosaic_0001>

<bundles_post_ra>
// kernel: tpu_custom_call.1
= control target key start
LH: loop header
LB: loop body
LE: loop exit
PB: predicated region body
PF: predicated region fallthrough
CT: control target
= control target key end

     0   :  { %v939_v1 = vmov 0.0   ;;  %vm940_vm0 = vmmov 0   ;;  %vm46_vm1 = vcmask 261120   ;;  %s1182_s0 = inlined_call_operand.vmem [shape: bf16[8,32], index: 0, kind: input, shape index: {}]   ;;  %s1183_s1 = inlined_call_operand.vmem [shape: bf16[32,128], index: 1, kind: input, shape index: {}]   ;;  %s1184_s2 = inlined_call_operand.vmem [shape: f32[1,128], index: 2, kind: input, shape index: {}]   ;;  %s1185_s3 = inlined_call_operand.vmem [shape: bf16[128,784], index: 3, kind: input, shape index: {}]   ;;  %s1186_s4 = inlined_call_operand.vmem [shape: f32[1,784], index: 4, kind: input, shape index: {}]   ;;  %s1187_s5 = inlined_call_operand.hbm [shape: f32[8,784], index: 5, kind: output, shape index: {}]  }
   0x1   :  { %v805_v0 = vld [vmem:[%s1183_s1] sm:$0xff]   ;;  %773 = vmatprep.subr.bf16.mxu0 %v939_v1  ;;  %v806_v2 = vld [vmem:[%s1183_s1 + $0x8] sm:$0xff]   ;;  %777 = vmatprep.mubr.msk.bf16.mxu0 %vm940_vm0, %v939_v1  ;;  %v813_v7 = vld [vmem:[%s1185_s3 + $0x3c] ss:$28 sps:$4 sm:$0xff]  }
   0x2   :  { %774 = vmatpush3.bf16.msra.mxu0 %v805_v0  ;;  %v807_v3 = vld [vmem:[%s1185_s3 + $0x4] ss:$28 sps:$4 sm:$0xff]   ;;  %v811_v5 = vld [vmem:[%s1185_s3 + $0xc] ss:$28 sps:$4 sm:$0xff]   ;;  %v818_v10 = vld [vmem:[%s1185_s3 + $0x38] ss:$28 sps:$4 sm:$0xff]  }
   0x3   :  { %775 = vmatprep.subr.bf16.mxu0 %v939_v1  ;;  %v22_v4 = vld [vmem:[%s1182_s0] sm:$0xf]  ;;  %481 = vmatprep.subr.bf16.mxu1 %v807_v3  ;;  %v809_v8 = vld [vmem:[%s1185_s3 + $0x8] ss:$28 sps:$4 sm:$0xff]   ;;  %v819_v11 = vld [vmem:[%s1185_s3 + $0x74] ss:$28 sps:$4 sm:$0xff]  }
   0x4   :  { %v812_v6 = vld [vmem:[%s1185_s3] ss:$28 sps:$4 sm:$0xff]   ;;  %v824_v14 = vld [vmem:[%s1185_s3 + $0x70] ss:$28 sps:$4 sm:$0xff]   ;;  %v821_v16 = vld [vmem:[%s1185_s3 + $0x78] ss:$28 sps:$4 sm:$0xff]  }
   0x5   :  { %482 = vmatpush1.bf16.msra.mxu1 %v812_v6  ;;  %v817_v9 = vld [vmem:[%s1185_s3 + $0x44] ss:$28 sps:$4 sm:$0xff]   ;;  %v823_v13 = vld [vmem:[%s1185_s3 + $0x7c] ss:$28 sps:$4 sm:$0xff]   ;;  %v825_v15 = vld [vmem:[%s1185_s3 + $0xac] ss:$28 sps:$4 sm:$0xff]  }
   0x6   :  { %776 = vmatpush3.bf16.msra.mxu0 %v806_v2  ;;  %483 = vmatprep.subr.bf16.mxu1 %v813_v7  ;;  %v815_v12 = vld [vmem:[%s1185_s3 + $0x40] ss:$28 sps:$4 sm:$0xff]   ;;  %v830_v17 = vld [vmem:[%s1185_s3 + $0xa8] ss:$28 sps:$4 sm:$0xff]   ;;  %v829_v18 = vld [vmem:[%s1185_s3 + $0xb4] ss:$28 sps:$4 sm:$0xff]  }
   0x7   :  { %522 = vmatprep.subr.bf16.mxu0 %v811_v5  ;;  %v831_v19 = vld [vmem:[%s1185_s3 + $0xe4] ss:$28 sps:$4 sm:$0xff]   ;;  %v827_v20 = vld [vmem:[%s1185_s3 + $0xb0] ss:$28 sps:$4 sm:$0xff]   ;;  %v837_v23 = vld [vmem:[%s1185_s3 + $0x11c] ss:$28 sps:$4 sm:$0xff]  }
   0x8   :  { %v835_v21 = vld [vmem:[%s1185_s3 + $0xec] ss:$28 sps:$4 sm:$0xff]   ;;  %v836_v22 = vld [vmem:[%s1185_s3 + $0xe0] ss:$28 sps:$4 sm:$0xff]   ;;  %v842_v25 = vld [vmem:[%s1185_s3 + $0x118] ss:$28 sps:$4 sm:$0xff]  }
   0x9   :  { %778 = vmatmul.mubr.msk.bf16.vlgmr.msra.gmra.mrb[0].mxu0 %vm46_vm1, %v22_v4  ;;  %484 = vmatpush1.bf16.msra.mxu1 %v818_v10  ;;  %v833_v24 = vld [vmem:[%s1185_s3 + $0xe8] ss:$28 sps:$4 sm:$0xff]   ;;  %v843_v27 = vld [vmem:[%s1185_s3 + $0x154] ss:$28 sps:$4 sm:$0xff]   ;;  %v839_v28 = vld [vmem:[%s1185_s3 + $0x120] ss:$28 sps:$4 sm:$0xff]  }
   0xa   :  { %523 = vmatpush1.bf16.msra.mxu0 %v809_v8  ;;  %485 = vmatprep.subr.bf16.mxu1 %v819_v11  ;;  %v841_v26 = vld [vmem:[%s1185_s3 + $0x124] ss:$28 sps:$4 sm:$0xff]   ;;  %v848_v29 = vld [vmem:[%s1185_s3 + $0x150] ss:$28 sps:$4 sm:$0xff]   ;;  %v847_v30 = vld [vmem:[%s1185_s3 + $0x15c] ss:$28 sps:$4 sm:$0xff]  }
   0xb   :  { %524 = vmatprep.subr.bf16.mxu0 %v817_v9  ;;  %v845_v31 = vld [vmem:[%s1185_s3 + $0x158] ss:$28 sps:$4 sm:$0xff]  }
   0xd   :  { %486 = vmatpush1.bf16.msra.mxu1 %v824_v14 }
   0xe   :  { %525 = vmatpush1.bf16.msra.mxu0 %v815_v12  ;;  %487 = vmatprep.subr.bf16.mxu1 %v825_v15 }
   0xf   :  { %526 = vmatprep.subr.bf16.mxu0 %v823_v13 }
  0x11   :  { %488 = vmatpush1.bf16.msra.mxu1 %v830_v17 }
  0x12   :  { %527 = vmatpush1.bf16.msra.mxu0 %v821_v16  ;;  %489 = vmatprep.subr.bf16.mxu1 %v831_v19 }
  0x13   :  { %528 = vmatprep.subr.bf16.mxu0 %v829_v18 }
  0x15   :  { %490 = vmatpush1.bf16.msra.mxu1 %v836_v22 }
  0x16   :  { %529 = vmatpush1.bf16.msra.mxu0 %v827_v20  ;;  %491 = vmatprep.subr.bf16.mxu1 %v837_v23 }
  0x17   :  { %530 = vmatprep.subr.bf16.mxu0 %v835_v21 }
  0x19   :  { %492 = vmatpush1.bf16.msra.mxu1 %v842_v25 }
  0x1a   :  { %531 = vmatpush1.bf16.msra.mxu0 %v833_v24  ;;  %493 = vmatprep.subr.bf16.mxu1 %v843_v27 }
  0x1b   :  { %532 = vmatprep.subr.bf16.mxu0 %v841_v26 }
  0x1d   :  { %494 = vmatpush1.bf16.msra.mxu1 %v848_v29 }
  0x1e   :  { %533 = vmatpush1.bf16.msra.mxu0 %v839_v28 }
  0x1f   :  { %534 = vmatprep.subr.bf16.mxu0 %v847_v30 }
  0x20   :  { %10 = vsyncpa [#allocation3], 0  ;;  %v849_v32 = vld [vmem:[%s1185_s3 + $0x18c] ss:$28 sps:$4 sm:$0xff]   ;;  %v853_v33 = vld [vmem:[%s1185_s3 + $0x194] ss:$28 sps:$4 sm:$0xff]   ;;  %v158_v6 = vlaneseq }
  0x21   :  { %v851_v34 = vld [vmem:[%s1185_s3 + $0x190] ss:$28 sps:$4 sm:$0xff]   ;;  %v854_v35 = vld [vmem:[%s1185_s3 + $0x188] ss:$28 sps:$4 sm:$0xff]   ;;  %495 = vmatprep.subr.bf16.mxu1 %v849_v32  ;;  %v941_v37 = vmov 0   ;;  %vm685_vm2 = vcmask 130048  }
  0x22   :  { %535 = vmatpush1.bf16.msra.mxu0 %v845_v31  ;;  %496 = vmatpush1.bf16.msra.mxu1 %v854_v35  ;;  %v857_v36 = vld [vmem:[%s1185_s3 + $0x14] ss:$28 sps:$4 sm:$0xff]   ;;  %v701_v38 = vld [vmem:[%s1184_s2] ss:$0 sm:$0xff]  ;;  %v861_v48 = vld [vmem:[%s1185_s3 + $0x4c] ss:$28 sps:$4 sm:$0xff]  }
  0x23   :  { %536 = vmatprep.subr.bf16.mxu0 %v853_v33  ;;  %513 = vmatprep.mubr.bf16.mxu1 %v941_v37  ;;  %v855_v45 = vld [vmem:[%s1185_s3 + $0x10] ss:$28 sps:$4 sm:$0xff]   ;;  %v858_v46 = vld [vmem:[%s1185_s3 + $0x18] ss:$28 sps:$4 sm:$0xff]   ;;  %v859_v49 = vld [vmem:[%s1185_s3 + $0x48] ss:$28 sps:$4 sm:$0xff]  }
  0x24   :  { %554 = vmatprep.mubr.bf16.mxu0 %v941_v37  ;;  %563 = vmatprep.subr.bf16.mxu1 %v857_v36  ;;  %v862_v50 = vld [vmem:[%s1185_s3 + $0x50] ss:$28 sps:$4 sm:$0xff]   ;;  %v865_v51 = vld [vmem:[%s1185_s3 + $0x84] ss:$28 sps:$4 sm:$0xff]   ;;  %v869_v54 = vld [vmem:[%s1185_s3 + $0xbc] ss:$28 sps:$4 sm:$0xff]  }
  0x25   :  { %v863_v52 = vld [vmem:[%s1185_s3 + $0x80] ss:$28 sps:$4 sm:$0xff]   ;;  %v866_v53 = vld [vmem:[%s1185_s3 + $0x88] ss:$28 sps:$4 sm:$0xff]   ;;  %v867_v55 = vld [vmem:[%s1185_s3 + $0xb8] ss:$28 sps:$4 sm:$0xff]  }
  0x26   :  { %537 = vmatpush1.bf16.msra.mxu0 %v851_v34  ;;  %v870_v56 = vld [vmem:[%s1185_s3 + $0xc0] ss:$28 sps:$4 sm:$0xff]   ;;  %v873_v57 = vld [vmem:[%s1185_s3 + $0xf4] ss:$28 sps:$4 sm:$0xff]   ;;  %v877_v60 = vld [vmem:[%s1185_s3 + $0x12c] ss:$28 sps:$4 sm:$0xff]  }
  0x27   :  { %781 = vmatprep.subr.bf16.mxu0 %v939_v1  ;;  %v871_v58 = vld [vmem:[%s1185_s3 + $0xf0] ss:$28 sps:$4 sm:$0xff]   ;;  %v874_v59 = vld [vmem:[%s1185_s3 + $0xf8] ss:$28 sps:$4 sm:$0xff]   ;;  %v875_v61 = vld [vmem:[%s1185_s3 + $0x128] ss:$28 sps:$4 sm:$0xff]  }
  0x28   :  { %v878_v62 = vld [vmem:[%s1185_s3 + $0x130] ss:$28 sps:$4 sm:$0xff]   ;;  %v881_v63 = vld [vmem:[%s1185_s3 + $0x164] ss:$28 sps:$4 sm:$0xff]   ;;  %v885_v3 = vld [vmem:[%s1185_s3 + $0x19c] ss:$28 sps:$4 sm:$0xff]  }
  0x29   :  { %v879_v0 = vld [vmem:[%s1185_s3 + $0x160] ss:$28 sps:$4 sm:$0xff]   ;;  %v882_v2 = vld [vmem:[%s1185_s3 + $0x168] ss:$28 sps:$4 sm:$0xff]   ;;  %v883_v4 = vld [vmem:[%s1185_s3 + $0x198] ss:$28 sps:$4 sm:$0xff]  }
  0x2a   :  { %v886_v5 = vld [vmem:[%s1185_s3 + $0x1a0] ss:$28 sps:$4 sm:$0xff]   ;;  %v159_v7 = vshrl.u32 %v158_v6, 7  ;;  %s942_s3 = smov [#allocation2]  }
  0x2b   :  { %v156_v10 = vld [vmem:[%s1186_s4] sm:$0x7f]  ;;  %s693_s4 = sshll.u32 %s942_s3, 4  ;;  %s694_s4 = int_to_ptr.vmem [resolvable:$true] %s693_s4 }
  0x2c   :  { %v160_v8 = vsub.s32 0, %v159_v7  ;;  %v168_v9 = vsub.s32 2, %v159_v7  ;;  %v164_v11 = vsub.s32 1, %v159_v7  ;;  %v172_v12 = vsub.s32 3, %v159_v7  ;;  %s915_s29 = scalar_lea.vmem %s694_s4, 896  ;;  %p920_p1 = scmp.lt.s32.totalorder %s694_s4, %s694_s4 }
  0x2d   :  { %p916_p0 = scmp.ne.s32.totalorder %s694_s4, %s915_s29  ;;  %p921_p2 = scmp.lt.s32.totalorder %s915_s29, %s915_s29 }
  0x2e   :  { %v161_v13 = vrot.slane %v156_v10, %v160_v8  ;;  %v169_v14 = vrot.slane %v156_v10, %v168_v9  ;;  %v165_v15 = vrot.slane %v156_v10, %v164_v11  ;;  %v173_v16 = vrot.slane %v156_v10, %v172_v12 }
  0x2f   :  { %p922_p3 = por %p921_p2, %p920_p1 }
  0x31   :  { %p923_p4 = pnand %p922_p3, %p916_p0 }
  0xdc   :  { %v84_v39 = vpop.f32.mrb[0].mxu0 }
  0xdd   :  { %v85_v40 = vadd.f32 %v701_v38, %v84_v39  ;;  %v779_v41 = vpop.f32.mrb[1].mxu0 }
  0xde   :  { %v87_v42 = vpop.f32.mrb[2].mxu0 }
  0xdf   :  { %v90_v43 = vmax.f32 %v85_v40, 0.0  ;;  %v780_v44 = vpop.f32.mrb[3].mxu0 }
  0xe0   :  { %v176_v44 = vsub.s32 4, %v159_v7 }
  0xe1   :  { %v91_v47 = vpack.c.bf16 %v90_v43, %v90_v43 }
  0xe3   :  { %514 = vmatmul.mubr.bf16.vlgmr.msra.gmra.mrb[0].mxu1 %v91_v47  ;;  %555 = vmatmul.mubr.bf16.vlgmr.msra.gmra.mrb[4].mxu0 %v91_v47 }
  0xe4   :  { %564 = vmatpush1.bf16.msra.mxu1 %v855_v45  ;;  %782 = vmatpush3.bf16.msra.mxu0 %v858_v46  ;;  %v184_v45 = vsub.s32 6, %v159_v7  ;;  %v180_v46 = vsub.s32 5, %v159_v7 }
  0xe5   :  { %565 = vmatprep.subr.bf16.mxu1 %v861_v48  ;;  %783 = vmatprep.subr.bf16.mxu0 %v939_v1 }
  0xe6   :  { %595 = vmatprep.mubr.bf16.mxu1 %v941_v37  ;;  %797 = vmatprep.mubr.msk.bf16.mxu0 %vm940_vm0, %v939_v1  ;;  %v185_v48 = vrot.slane %v156_v10, %v184_v45 }
  0xe8   :  { %566 = vmatpush1.bf16.msra.mxu1 %v859_v49  ;;  %784 = vmatpush3.bf16.msra.mxu0 %v862_v50  ;;  %v181_v50 = vrot.slane %v156_v10, %v180_v46 }
  0xe9   :  { %567 = vmatprep.subr.bf16.mxu1 %v865_v51  ;;  %785 = vmatprep.subr.bf16.mxu0 %v939_v1 }
  0xec   :  { %568 = vmatpush1.bf16.msra.mxu1 %v863_v52  ;;  %786 = vmatpush3.bf16.msra.mxu0 %v866_v53 }
  0xed   :  { %569 = vmatprep.subr.bf16.mxu1 %v869_v54  ;;  %787 = vmatprep.subr.bf16.mxu0 %v939_v1 }
  0xf0   :  { %570 = vmatpush1.bf16.msra.mxu1 %v867_v55  ;;  %788 = vmatpush3.bf16.msra.mxu0 %v870_v56 }
  0xf1   :  { %571 = vmatprep.subr.bf16.mxu1 %v873_v57  ;;  %789 = vmatprep.subr.bf16.mxu0 %v939_v1 }
  0xf4   :  { %572 = vmatpush1.bf16.msra.mxu1 %v871_v58  ;;  %790 = vmatpush3.bf16.msra.mxu0 %v874_v59 }
  0xf5   :  { %573 = vmatprep.subr.bf16.mxu1 %v877_v60  ;;  %791 = vmatprep.subr.bf16.mxu0 %v939_v1 }
  0xf8   :  { %574 = vmatpush1.bf16.msra.mxu1 %v875_v61  ;;  %792 = vmatpush3.bf16.msra.mxu0 %v878_v62 }
  0xf9   :  { %575 = vmatprep.subr.bf16.mxu1 %v881_v63  ;;  %793 = vmatprep.subr.bf16.mxu0 %v939_v1 }
  0xfc   :  { %576 = vmatpush1.bf16.msra.mxu1 %v879_v0  ;;  %794 = vmatpush3.bf16.msra.mxu0 %v882_v2 }
  0xfd   :  { %577 = vmatprep.subr.bf16.mxu1 %v885_v3  ;;  %795 = vmatprep.subr.bf16.mxu0 %v939_v1 }
 0x100   :  { %578 = vmatpush1.bf16.msra.mxu1 %v883_v4  ;;  %796 = vmatpush3.bf16.msra.mxu0 %v886_v5 }
 0x103   :  { %596 = vmatmul.mubr.bf16.vlgmr.msra.gmra.mrb[4].mxu1 %v91_v47  ;;  %798 = vmatmul.mubr.bf16.vlgmr.msra.gmra.mrb[8].mxu0 %v91_v47  ;;  %v177_v47 = vrot.slane %v156_v10, %v176_v44 }
 0x1b6   :  { %v515_v17 = vpop.f32.mrb[0].mxu1  ;;  %v556_v1 = vpop.f32.mrb[4].mxu0 }
 0x1b7   :  { %v516_v18 = vadd.f32 %v515_v17, %v161_v13  ;;  %v557_v19 = vadd.f32 %v556_v1, %v169_v14  ;;  %v517_v20 = vpop.f32.mrb[1].mxu1  ;;  %v558_v21 = vpop.f32.mrb[5].mxu0 }
 0x1b8   :  { %v518_v22 = vadd.f32 %v517_v20, %v165_v15  ;;  %v559_v23 = vadd.f32 %v558_v21, %v173_v16  ;;  %v519_v24 = vpop.f32.mrb[2].mxu1  ;;  %v560_v25 = vpop.f32.mrb[6].mxu0 }
 0x1b9   :  { %v644_v26 = vsub.f32 0.0, %v516_v18  ;;  %v646_v27 = vsub.f32 0.0, %v557_v19  ;;  %v520_v28 = vpop.f32.mrb[3].mxu1  ;;  %v561_v29 = vpop.f32.mrb[7].mxu0 }
 0x1ba   :  { %v645_v30 = vsub.f32 0.0, %v518_v22  ;;  %v647_v31 = vsub.f32 0.0, %v559_v23 }
 0x1bb   :  { %v651_v32 = vmul.f32 1.442695, %v644_v26  ;;  %v655_v33 = vmul.f32 1.442695, %v646_v27 }
 0x1bc   :  { %v653_v34 = vmul.f32 1.442695, %v645_v30  ;;  %v657_v35 = vmul.f32 1.442695, %v647_v31 }
 0x1bd   :  { %887 = vpow2.f32 %v651_v32 }
 0x1be   :  { %889 = vpow2.f32 %v655_v33 }
 0x1bf   :  { %891 = vpow2.f32 %v653_v34 }
 0x1c0   :  { %893 = vpow2.f32 %v657_v35 }
 0x1c7   :  { %v888_v36 = vpop.eup %887 }
 0x1c8   :  { %v890_v37 = vpop.eup %889  ;;  %v665_v38 = vadd.f32 1.0, %v888_v36 }
 0x1c9   :  { %v892_v39 = vpop.eup %891  ;;  %v667_v40 = vadd.f32 1.0, %v890_v37 }
 0x1ca   :  { %v894_v41 = vpop.eup %893  ;;  %895 = vrcp.f32 %v665_v38  ;;  %v666_v42 = vadd.f32 1.0, %v892_v39 }
 0x1cb   :  { %897 = vrcp.f32 %v667_v40  ;;  %v668_v43 = vadd.f32 1.0, %v894_v41 }
 0x1cc   :  { %899 = vrcp.f32 %v666_v42 }
 0x1cd   :  { %901 = vrcp.f32 %v668_v43 }
 0x1d4   :  { %v896_v49 = vpop.eup %895 }
 0x1d5   :  { %v898_v51 = vpop.eup %897  ;;  %679 = vst [vmem:[#allocation2] sm:$0xff] %v896_v49 }
 0x1d6   :  { %v900_v52 = vpop.eup %899  ;;  %681 = vst [vmem:[#allocation2 + $0x10] sm:$0xff] %v898_v51  ;;  %v597_v53 = vpop.f32.mrb[4].mxu1 }
 0x1d7   :  { %v638_v54 = vpop.f32.mrb[8].mxu0  ;;  %v902_v55 = vpop.eup %901  ;;  %680 = vst [vmem:[#allocation2 + $0x8] sm:$0xff] %v900_v52  ;;  %v598_v56 = vadd.f32 %v597_v53, %v177_v47 }
 0x1d8   :  { %v639_v57 = vadd.f32 %v638_v54, %v185_v48  ;;  %v599_v58 = vpop.f32.mrb[5].mxu1  ;;  %v799_v59 = vpop.f32.mrb[9].mxu0  ;;  %682 = vst [vmem:[#allocation2 + $0x18] sm:$0xff] %v902_v55 }
 0x1d9   :  { %v600_v60 = vadd.f32 %v599_v58, %v181_v50  ;;  %v601_v61 = vpop.f32.mrb[6].mxu1  ;;  %v641_v62 = vpop.f32.mrb[10].mxu0  ;;  %v648_v63 = vsub.f32 0.0, %v598_v56 }
 0x1da   :  { %v650_v0 = vsub.f32 0.0, %v639_v57  ;;  %v602_v2 = vpop.f32.mrb[7].mxu1  ;;  %v800_v3 = vpop.f32.mrb[11].mxu0 }
 0x1db   :  { %v649_v4 = vsub.f32 0.0, %v600_v60  ;;  %v659_v5 = vmul.f32 1.442695, %v648_v63 }
 0x1dc   :  { %v663_v6 = vmul.f32 1.442695, %v650_v0 }
 0x1dd   :  { %v661_v7 = vmul.f32 1.442695, %v649_v4  ;;  %903 = vpow2.f32 %v659_v5 }
 0x1de   :  { %905 = vpow2.f32 %v663_v6 }
 0x1df   :  { %907 = vpow2.f32 %v661_v7 }
 0x1e7   :  { %v904_v8 = vpop.eup %903 }
 0x1e8   :  { %v906_v9 = vpop.eup %905  ;;  %v669_v10 = vadd.f32 1.0, %v904_v8 }
 0x1e9   :  { %v908_v11 = vpop.eup %907  ;;  %v671_v12 = vadd.f32 1.0, %v906_v9 }
 0x1ea   :  { %909 = vrcp.f32 %v669_v10  ;;  %v670_v13 = vadd.f32 1.0, %v908_v11 }
 0x1eb   :  { %911 = vrcp.f32 %v671_v12 }
 0x1ec   :  { %913 = vrcp.f32 %v670_v13 }
 0x1f4   :  { %v910_v14 = vpop.eup %909 }
 0x1f5   :  { %v912_v15 = vpop.eup %911  ;;  %683 = vst [vmem:[#allocation2 + $0x20] sm:$0xff] %v910_v14 }
 0x1f6   :  { %v914_v16 = vpop.eup %913  ;;  %686 = vst.msk [vmem:[#allocation2 + $0x30] sm:$0xff] %vm685_vm2, %v912_v15 }
 0x1f7   :  { %684 = vst [vmem:[#allocation2 + $0x28] sm:$0xff] %v914_v16 }
 0x1f8   :  { %926 = shalt.err (!%p923_p4)
}
 0x1f9   :  { %s927_s7 = scalar_lea.hbm %s1187_s5, 896 }
 0x1fa   :  { %p928_p5 = scmp.ne.s32.totalorder %s1187_s5, %s927_s7  ;;  %p931_p6 = scmp.lt.u32.totalorder %s927_s7, %s1187_s5 }
 0x1fc   :  { %p933_p7 = pnand %p931_p6, %p928_p5 }
 0x1fe   :  { %936 = shalt.err (!%p933_p7)
}
 0x1ff   :  { %696 = dma.vmem_to_hbm [thread:$0]  %s694_s4, 896, %s1187_s5, [#allocation3]  }
 0x200   :  { %937 = dma.done.wait [#allocation3], 896  }
 0x201   :  { %938 = vsyncadd [#allocation3], 4294966400 }
 0x202   :  { %700 = vsyncpa [#allocation3], 1 }

</bundles_post_ra>
